<compile_context>
chip_gen: v7x
topology: tpu7x:2x2x1
jax: 0.10.0
libtpu: 0.0.40
codegen_flags: <defaults>
</compile_context>

<pallas_src>
import functools

import jax
import jax.numpy as jnp
from jax.experimental import pallas as pl
from jax.experimental.pallas import tpu as pltpu


def _round_up(a: int, b: int) -> int:
    return ((a + b - 1) // b) * b


def _weight_norm(v: jax.Array, g: jax.Array) -> jax.Array:
    """PyTorch weight_norm (dim=0): w = g * v / ||v||, norm over (C_in, K)."""
    norm = jnp.sqrt(jnp.sum(v * v, axis=(1, 2), keepdims=True))
    return v * (g.reshape(-1, 1, 1) / norm)


def _pad_axis(a: jax.Array, axis: int, target: int) -> jax.Array:
    if a.shape[axis] == target:
        return a
    pads = [(0, 0)] * a.ndim
    pads[axis] = (0, target - a.shape[axis])
    return jnp.pad(a, pads)


# ---------------------------------------------------------------------------
# Kernel helpers (traced inside the Pallas kernel body)
# ---------------------------------------------------------------------------
def _stage_causal_pad(xp_ref, data):
    """Write `data` (C, L) into scratch (C, P + L), left-padded with zeros.

    P >= (K-1)*dilation and is a multiple of 128 so the data store stays
    lane-aligned.  This folds F.pad + Chomp1d into the conv itself.
    """
    c, width = xp_ref.shape
    l = data.shape[-1]
    p = width - l  # static Python int
    if p > 0:
        xp_ref[:, :p] = jnp.zeros((c, p), dtype=xp_ref.dtype)
    xp_ref[:, p:] = data.astype(xp_ref.dtype)
    return p


def _causal_conv_bias_relu(xp_ref, w_ref, b_ref, l, p, dilation):
    """ReLU(chomp(dilated_conv(x)) + b) over one (C_in, L) activation slab.

    xp_ref: (C_in, P + L) causally zero-padded input in VMEM
    w_ref : (K, C_out, C_in) conv taps
    b_ref : (C_out, 1)
    Only the first L output columns are ever computed (chomp folded in).
    """
    k_taps, c_out = w_ref.shape[0], w_ref.shape[1]
    acc = jnp.zeros((c_out, l), jnp.float32)
    for k in range(k_taps):                       # static unroll; K is tiny
        start = p - (k_taps - 1 - k) * dilation   # static offset into scratch
        acc = acc + jnp.dot(w_ref[k], xp_ref[:, pl.ds(start, l)],
                            preferred_element_type=jnp.float32)
    return jnp.maximum(acc + b_ref[...], 0.0)


def _temporal_block_body(x_ref, w1_ref, b1_ref, w2_ref, b2_ref, wd_ref, bd_ref,
                         o_ref, xp1_ref, xp2_ref, dilation):
    l = x_ref.shape[2]
    x = x_ref[0]                                  # (C_in, L)

    # conv1 -> chomp -> bias -> ReLU  (dropout1 is identity in inference)
    p1 = _stage_causal_pad(xp1_ref, x)
    h = _causal_conv_bias_relu(xp1_ref, w1_ref, b1_ref, l, p1, dilation)

    # conv2 -> chomp -> bias -> ReLU; h is consumed straight from VMEM
    p2 = _stage_causal_pad(xp2_ref, h)
    out = _causal_conv_bias_relu(xp2_ref, w2_ref, b2_ref, l, p2, dilation)

    # Residual path (fused 1x1 downsample projection when channels change)
    if wd_ref is None:
        res = x.astype(jnp.float32)
    else:
        res = (jnp.dot(wd_ref[0], x, preferred_element_type=jnp.float32)
               + bd_ref[...])
    o_ref[...] = jnp.maximum(out + res, 0.0)[None].astype(o_ref.dtype)


def _temporal_block_kernel(x_ref, w1_ref, b1_ref, w2_ref, b2_ref,
                           o_ref, xp1_ref, xp2_ref, *, dilation):
    _temporal_block_body(x_ref, w1_ref, b1_ref, w2_ref, b2_ref, None, None,
                         o_ref, xp1_ref, xp2_ref, dilation)


def _temporal_block_ds_kernel(x_ref, w1_ref, b1_ref, w2_ref, b2_ref,
                              wd_ref, bd_ref, o_ref, xp1_ref, xp2_ref, *,
                              dilation):
    _temporal_block_body(x_ref, w1_ref, b1_ref, w2_ref, b2_ref, wd_ref, bd_ref,
                         o_ref, xp1_ref, xp2_ref, dilation)


# ---------------------------------------------------------------------------
# pallas_call wrappers
# ---------------------------------------------------------------------------
def _temporal_block_call(x, w1, b1, w2, b2, dilation, wd=None, bd=None):
    """One fused TemporalBlock.  All channel/time dims are already padded."""
    n, c_in, lp = x.shape
    k_taps, c_out, _ = w1.shape
    pad_al = _round_up((k_taps - 1) * dilation, 128)  # aligned causal pad

    act_in_spec = pl.BlockSpec((1, c_in, lp), lambda i: (i, 0, 0))
    act_out_spec = pl.BlockSpec((1, c_out, lp), lambda i: (i, 0, 0))
    bias_spec = pl.BlockSpec((c_out, 1), lambda i: (0, 0))

    inputs = [x, w1, b1, w2, b2]
    in_specs = [
        act_in_spec,
        pl.BlockSpec((k_taps, c_out, c_in), lambda i: (0, 0, 0)),
        bias_spec,
        pl.BlockSpec((k_taps, c_out, c_out), lambda i: (0, 0, 0)),
        bias_spec,
    ]
    if wd is None:
        kernel = functools.partial(_temporal_block_kernel, dilation=dilation)
    else:
        kernel = functools.partial(_temporal_block_ds_kernel, dilation=dilation)
        inputs += [wd, bd]
        in_specs += [pl.BlockSpec((1, c_out, c_in), lambda i: (0, 0, 0)),
                     bias_spec]

    return pl.pallas_call(
        kernel,
        out_shape=jax.ShapeDtypeStruct((n, c_out, lp), x.dtype),
        grid=(n,),
        in_specs=in_specs,
        out_specs=act_out_spec,
        scratch_shapes=[
            pltpu.VMEM((c_in, pad_al + lp), x.dtype),   # padded x  (conv1 in)
            pltpu.VMEM((c_out, pad_al + lp), x.dtype),  # padded h  (conv2 in)
        ],
        compiler_params=pltpu.CompilerParams(
            dimension_semantics=("parallel",)),
    )(*inputs)


def temporal_conv_net(x, layer_params):
    """Forward pass of TemporalConvNet.  x: (N, C_in, L) -> (N, C_last, L).

    layer_params[i] holds weight-norm params v1/g1/b1, v2/g2/b2 and, when the
    channel count changes, the 1x1 downsample wd/bd.
    """
    # TODO(synk): Dropout layers are identity (inference/eval mode); training
    # mode random masking is not implemented.
    n, c0, l = x.shape
    lp = _round_up(l, 128)      # lane-dense time; causal conv => tail is inert
    c0p = _round_up(c0, 8)      # sublane-aligned channels (zero-padded, inert)
    y = jnp.pad(x, ((0, 0), (0, c0p - c0), (0, lp - l)))

    c_prev, c_prev_p = c0, c0p
    for i, p in enumerate(layer_params):
        dilation = 2 ** i
        c_out = p["v1"].shape[0]
        c_out_p = _round_up(c_out, 8)

        w1 = jnp.transpose(_weight_norm(p["v1"], p["g1"]), (2, 0, 1))
        w2 = jnp.transpose(_weight_norm(p["v2"], p["g2"]), (2, 0, 1))
        w1 = _pad_axis(_pad_axis(w1, 1, c_out_p), 2, c_prev_p)
        w2 = _pad_axis(_pad_axis(w2, 1, c_out_p), 2, c_out_p)
        b1 = _pad_axis(p["b1"], 0, c_out_p).reshape(-1, 1)
        b2 = _pad_axis(p["b2"], 0, c_out_p).reshape(-1, 1)

        if "wd" in p:  # channel change -> fused 1x1 downsample residual
            wd = jnp.transpose(p["wd"], (2, 0, 1))
            wd = _pad_axis(_pad_axis(wd, 1, c_out_p), 2, c_prev_p)
            bd = _pad_axis(p["bd"], 0, c_out_p).reshape(-1, 1)
            y = _temporal_block_call(y, w1, b1, w2, b2, dilation, wd=wd, bd=bd)
        else:          # identity residual (requires c_prev == c_out)
            y = _temporal_block_call(y, w1, b1, w2, b2, dilation)
        c_prev, c_prev_p = c_out, c_out_p

    return y[:, :c_prev, :l]


# ---------------------------------------------------------------------------
# Pure-JAX reference (mirrors the PyTorch module op-by-op)
# ---------------------------------------------------------------------------
def _ref_tcn(x, layer_params, kernel_size):
    def conv1d(inp, w, b, dilation, padding):
        out = jax.lax.conv_general_dilated(
            inp, w, window_strides=(1,), padding=[(padding, padding)],
            rhs_dilation=(dilation,), dimension_numbers=("NCH", "OIH", "NCH"))
        return out + b[None, :, None]

    l = x.shape[2]
    y = x
    for i, p in enumerate(layer_params):
        d = 2 ** i
        pad = (kernel_size - 1) * d
        w1 = _weight_norm(p["v1"], p["g1"])
        w2 = _weight_norm(p["v2"], p["g2"])
        h = jnp.maximum(conv1d(y, w1, p["b1"], d, pad)[:, :, :l], 0.0)
        out = jnp.maximum(conv1d(h, w2, p["b2"], d, pad)[:, :, :l], 0.0)
        res = conv1d(y, p["wd"], p["bd"], 1, 0) if "wd" in p else y
        y = jnp.maximum(out + res, 0.0)
    return y


if __name__ == "__main__":
    key = jax.random.PRNGKey(0)
    keys = iter(jax.random.split(key, 32))

    N, C_IN, L = 2, 4, 16
    NUM_CHANNELS = [8, 8]
    KERNEL_SIZE = 2

    x = jax.random.normal(next(keys), (N, C_IN, L), dtype=jnp.float32)

    layer_params = []
    c_prev = C_IN
    for c_out in NUM_CHANNELS:
        p = {
            "v1": 0.1 * jax.random.normal(next(keys), (c_out, c_prev, KERNEL_SIZE), jnp.float32),
            "g1": jax.random.uniform(next(keys), (c_out,), jnp.float32, 0.2, 0.6),
            "b1": 0.1 * jax.random.normal(next(keys), (c_out,), jnp.float32),
            "v2": 0.1 * jax.random.normal(next(keys), (c_out, c_out, KERNEL_SIZE), jnp.float32),
            "g2": jax.random.uniform(next(keys), (c_out,), jnp.float32, 0.2, 0.6),
            "b2": 0.1 * jax.random.normal(next(keys), (c_out,), jnp.float32),
        }
        if c_prev != c_out:
            p["wd"] = 0.1 * jax.random.normal(next(keys), (c_out, c_prev, 1), jnp.float32)
            p["bd"] = 0.1 * jax.random.normal(next(keys), (c_out,), jnp.float32)
        layer_params.append(p)
        c_prev = c_out

    out = temporal_conv_net(x, layer_params)
    out = jax.block_until_ready(out)

    ref = _ref_tcn(x, layer_params, KERNEL_SIZE)
    assert out.shape == (N, NUM_CHANNELS[-1], L), out.shape
    assert out.dtype == x.dtype
    err = float(jnp.max(jnp.abs(out - ref)))
    scale = float(jnp.max(jnp.abs(ref)))
    # Loose tolerance: the Pallas MXU path and the XLA conv reference may use
    # different default f32 matmul precisions on TPU.
    assert err <= 2e-2 * max(1.0, scale), (err, scale)
    print("KERNEL_OK")
</pallas_src>

<mosaic_0001>
module attributes {stable_mosaic.version = 11 : i64} {
  func.func @_temporal_block_ds_kernel(%arg0: i32, %arg1: memref<1x8x128xf32, #tpu.memory_space<vmem>>, %arg2: memref<2x8x8xf32, #tpu.memory_space<vmem>>, %arg3: memref<8x1xf32, #tpu.memory_space<vmem>>, %arg4: memref<2x8x8xf32, #tpu.memory_space<vmem>>, %arg5: memref<8x1xf32, #tpu.memory_space<vmem>>, %arg6: memref<1x8x8xf32, #tpu.memory_space<vmem>>, %arg7: memref<8x1xf32, #tpu.memory_space<vmem>>, %arg8: memref<1x8x128xf32, #tpu.memory_space<vmem>>, %arg9: memref<8x256xf32, #tpu.memory_space<vmem>>, %arg10: memref<8x256xf32, #tpu.memory_space<vmem>>) attributes {dimension_semantics = [#tpu.dimension_semantics<parallel>], iteration_bounds = array<i64: 2>, scalar_prefetch = 0 : i64, scratch_operands = 2 : i64, tpu.core_type = #tpu.core_type<tc>, window_params = [{transform_indices = @transform_0, window_bounds = array<i64: 1, 8, 128>}, {pipeline_mode = #tpu.pipeline_mode<synchronous>, transform_indices = @transform_1, window_bounds = array<i64: 2, 8, 8>}, {pipeline_mode = #tpu.pipeline_mode<synchronous>, transform_indices = @transform_2, window_bounds = array<i64: 8, 1>}, {pipeline_mode = #tpu.pipeline_mode<synchronous>, transform_indices = @transform_3, window_bounds = array<i64: 2, 8, 8>}, {pipeline_mode = #tpu.pipeline_mode<synchronous>, transform_indices = @transform_4, window_bounds = array<i64: 8, 1>}, {pipeline_mode = #tpu.pipeline_mode<synchronous>, transform_indices = @transform_5, window_bounds = array<i64: 1, 8, 8>}, {pipeline_mode = #tpu.pipeline_mode<synchronous>, transform_indices = @transform_6, window_bounds = array<i64: 8, 1>}, {transform_indices = @transform_7, window_bounds = array<i64: 1, 8, 128>}]} {
    %c0 = arith.constant 0 : index
    %c0_0 = arith.constant 0 : index
    %c0_1 = arith.constant 0 : index
    %0 = vector.load %arg1[%c0, %c0_0, %c0_1] : memref<1x8x128xf32, #tpu.memory_space<vmem>>, vector<1x8x128xf32>
    %1 = vector.shape_cast %0 : vector<1x8x128xf32> to vector<8x128xf32>
    %cst = arith.constant 0.000000e+00 : f32
    %2 = vector.broadcast %cst : f32 to vector<8x128xf32>
    %c0_2 = arith.constant 0 : index
    %c0_3 = arith.constant 0 : index
    %3 = vector.load %arg9[%c0_2, %c0_3] : memref<8x256xf32, #tpu.memory_space<vmem>>, vector<8x128xf32>
    tpu.vector_store %arg9[%c0_2, %c0_3], %2 {strides = array<i32>} : memref<8x256xf32, #tpu.memory_space<vmem>>, vector<8x128xf32>,
    %c0_4 = arith.constant 0 : index
    %c128 = arith.constant 128 : index
    %4 = vector.load %arg9[%c0_4, %c128] : memref<8x256xf32, #tpu.memory_space<vmem>>, vector<8x128xf32>
    tpu.vector_store %arg9[%c0_4, %c128], %1 {strides = array<i32>} : memref<8x256xf32, #tpu.memory_space<vmem>>, vector<8x128xf32>,
    %cst_5 = arith.constant 0.000000e+00 : f32
    %5 = vector.broadcast %cst_5 : f32 to vector<8x128xf32>
    %c0_6 = arith.constant 0 : index
    %c0_7 = arith.constant 0 : index
    %c0_8 = arith.constant 0 : index
    %6 = vector.load %arg2[%c0_6, %c0_7, %c0_8] : memref<2x8x8xf32, #tpu.memory_space<vmem>>, vector<1x8x8xf32>
    %7 = vector.shape_cast %6 : vector<1x8x8xf32> to vector<8x8xf32>
    %c0_9 = arith.constant 0 : index
    %c127 = arith.constant 127 : index
    %8 = vector.load %arg9[%c0_9, %c127] : memref<8x256xf32, #tpu.memory_space<vmem>>, vector<8x128xf32>
    %cst_10 = arith.constant dense<0.000000e+00> : vector<8x128xf32>
    %9 = tpu.matmul %7, %8, %cst_10 {dimension_numbers = #tpu.dot_dimension_numbers<[1], [0], [0], [1], [0, 0, 1, 1], [], []>} : vector<8x8xf32>, vector<8x128xf32>, vector<8x128xf32> -> vector<8x128xf32>
    %10 = arith.addf %5, %9 : vector<8x128xf32>
    %c1 = arith.constant 1 : index
    %c0_11 = arith.constant 0 : index
    %c0_12 = arith.constant 0 : index
    %11 = vector.load %arg2[%c1, %c0_11, %c0_12] : memref<2x8x8xf32, #tpu.memory_space<vmem>>, vector<1x8x8xf32>
    %12 = vector.shape_cast %11 : vector<1x8x8xf32> to vector<8x8xf32>
    %c0_13 = arith.constant 0 : index
    %c128_14 = arith.constant 128 : index
    %13 = vector.load %arg9[%c0_13, %c128_14] : memref<8x256xf32, #tpu.memory_space<vmem>>, vector<8x128xf32>
    %cst_15 = arith.constant dense<0.000000e+00> : vector<8x128xf32>
    %14 = tpu.matmul %12, %13, %cst_15 {dimension_numbers = #tpu.dot_dimension_numbers<[1], [0], [0], [1], [0, 0, 1, 1], [], []>} : vector<8x8xf32>, vector<8x128xf32>, vector<8x128xf32> -> vector<8x128xf32>
    %15 = arith.addf %10, %14 : vector<8x128xf32>
    %c0_16 = arith.constant 0 : index
    %c0_17 = arith.constant 0 : index
    %16 = vector.load %arg3[%c0_16, %c0_17] : memref<8x1xf32, #tpu.memory_space<vmem>>, vector<8x1xf32>
    %17 = vector.broadcast %16 : vector<8x1xf32> to vector<8x128xf32>
    %18 = arith.addf %15, %17 : vector<8x128xf32>
    %cst_18 = arith.constant 0.000000e+00 : f32
    %19 = vector.broadcast %cst_18 : f32 to vector<8x128xf32>
    %20 = arith.maximumf %18, %19 : vector<8x128xf32>
    %cst_19 = arith.constant 0.000000e+00 : f32
    %21 = vector.broadcast %cst_19 : f32 to vector<8x128xf32>
    %c0_20 = arith.constant 0 : index
    %c0_21 = arith.constant 0 : index
    %22 = vector.load %arg10[%c0_20, %c0_21] : memref<8x256xf32, #tpu.memory_space<vmem>>, vector<8x128xf32>
    tpu.vector_store %arg10[%c0_20, %c0_21], %21 {strides = array<i32>} : memref<8x256xf32, #tpu.memory_space<vmem>>, vector<8x128xf32>,
    %c0_22 = arith.constant 0 : index
    %c128_23 = arith.constant 128 : index
    %23 = vector.load %arg10[%c0_22, %c128_23] : memref<8x256xf32, #tpu.memory_space<vmem>>, vector<8x128xf32>
    tpu.vector_store %arg10[%c0_22, %c128_23], %20 {strides = array<i32>} : memref<8x256xf32, #tpu.memory_space<vmem>>, vector<8x128xf32>,
    %cst_24 = arith.constant 0.000000e+00 : f32
    %24 = vector.broadcast %cst_24 : f32 to vector<8x128xf32>
    %c0_25 = arith.constant 0 : index
    %c0_26 = arith.constant 0 : index
    %c0_27 = arith.constant 0 : index
    %25 = vector.load %arg4[%c0_25, %c0_26, %c0_27] : memref<2x8x8xf32, #tpu.memory_space<vmem>>, vector<1x8x8xf32>
    %26 = vector.shape_cast %25 : vector<1x8x8xf32> to vector<8x8xf32>
    %c0_28 = arith.constant 0 : index
    %c127_29 = arith.constant 127 : index
    %27 = vector.load %arg10[%c0_28, %c127_29] : memref<8x256xf32, #tpu.memory_space<vmem>>, vector<8x128xf32>
    %cst_30 = arith.constant dense<0.000000e+00> : vector<8x128xf32>
    %28 = tpu.matmul %26, %27, %cst_30 {dimension_numbers = #tpu.dot_dimension_numbers<[1], [0], [0], [1], [0, 0, 1, 1], [], []>} : vector<8x8xf32>, vector<8x128xf32>, vector<8x128xf32> -> vector<8x128xf32>
    %29 = arith.addf %24, %28 : vector<8x128xf32>
    %c1_31 = arith.constant 1 : index
    %c0_32 = arith.constant 0 : index
    %c0_33 = arith.constant 0 : index
    %30 = vector.load %arg4[%c1_31, %c0_32, %c0_33] : memref<2x8x8xf32, #tpu.memory_space<vmem>>, vector<1x8x8xf32>
    %31 = vector.shape_cast %30 : vector<1x8x8xf32> to vector<8x8xf32>
    %c0_34 = arith.constant 0 : index
    %c128_35 = arith.constant 128 : index
    %32 = vector.load %arg10[%c0_34, %c128_35] : memref<8x256xf32, #tpu.memory_space<vmem>>, vector<8x128xf32>
    %cst_36 = arith.constant dense<0.000000e+00> : vector<8x128xf32>
    %33 = tpu.matmul %31, %32, %cst_36 {dimension_numbers = #tpu.dot_dimension_numbers<[1], [0], [0], [1], [0, 0, 1, 1], [], []>} : vector<8x8xf32>, vector<8x128xf32>, vector<8x128xf32> -> vector<8x128xf32>
    %34 = arith.addf %29, %33 : vector<8x128xf32>
    %c0_37 = arith.constant 0 : index
    %c0_38 = arith.constant 0 : index
    %35 = vector.load %arg5[%c0_37, %c0_38] : memref<8x1xf32, #tpu.memory_space<vmem>>, vector<8x1xf32>
    %36 = vector.broadcast %35 : vector<8x1xf32> to vector<8x128xf32>
    %37 = arith.addf %34, %36 : vector<8x128xf32>
    %cst_39 = arith.constant 0.000000e+00 : f32
    %38 = vector.broadcast %cst_39 : f32 to vector<8x128xf32>
    %39 = arith.maximumf %37, %38 : vector<8x128xf32>
    %c0_40 = arith.constant 0 : index
    %c0_41 = arith.constant 0 : index
    %c0_42 = arith.constant 0 : index
    %40 = vector.load %arg6[%c0_40, %c0_41, %c0_42] : memref<1x8x8xf32, #tpu.memory_space<vmem>>, vector<1x8x8xf32>
    %41 = vector.shape_cast %40 : vector<1x8x8xf32> to vector<8x8xf32>
    %cst_43 = arith.constant dense<0.000000e+00> : vector<8x128xf32>
    %42 = tpu.matmul %41, %1, %cst_43 {dimension_numbers = #tpu.dot_dimension_numbers<[1], [0], [0], [1], [0, 0, 1, 1], [], []>} : vector<8x8xf32>, vector<8x128xf32>, vector<8x128xf32> -> vector<8x128xf32>
    %c0_44 = arith.constant 0 : index
    %c0_45 = arith.constant 0 : index
    %43 = vector.load %arg7[%c0_44, %c0_45] : memref<8x1xf32, #tpu.memory_space<vmem>>, vector<8x1xf32>
    %44 = vector.broadcast %43 : vector<8x1xf32> to vector<8x128xf32>
    %45 = arith.addf %42, %44 : vector<8x128xf32>
    %46 = arith.addf %39, %45 : vector<8x128xf32>
    %cst_46 = arith.constant 0.000000e+00 : f32
    %47 = vector.broadcast %cst_46 : f32 to vector<8x128xf32>
    %48 = arith.maximumf %46, %47 : vector<8x128xf32>
    %49 = vector.shape_cast %48 : vector<8x128xf32> to vector<1x8x128xf32>
    %c0_47 = arith.constant 0 : index
    %c0_48 = arith.constant 0 : index
    %c0_49 = arith.constant 0 : index
    %50 = vector.load %arg8[%c0_47, %c0_48, %c0_49] : memref<1x8x128xf32, #tpu.memory_space<vmem>>, vector<1x8x128xf32>
    tpu.vector_store %arg8[%c0_47, %c0_48, %c0_49], %49 {strides = array<i32>} : memref<1x8x128xf32, #tpu.memory_space<vmem>>, vector<1x8x128xf32>,
    return
  }
  func.func @transform_0(%arg0: i32) -> (i32, i32, i32) {
    %c0_i32 = arith.constant 0 : i32
    %c0_i32_0 = arith.constant 0 : i32
    %c0_i32_1 = arith.constant 0 : i32
    return %arg0, %c0_i32, %c0_i32_0 : i32, i32, i32
  }
  func.func @transform_1(%arg0: i32) -> (i32, i32, i32) {
    %c0_i32 = arith.constant 0 : i32
    %c0_i32_0 = arith.constant 0 : i32
    %c0_i32_1 = arith.constant 0 : i32
    %c0_i32_2 = arith.constant 0 : i32
    return %c0_i32, %c0_i32_0, %c0_i32_1 : i32, i32, i32
  }
  func.func @transform_2(%arg0: i32) -> (i32, i32) {
    %c0_i32 = arith.constant 0 : i32
    %c0_i32_0 = arith.constant 0 : i32
    %c0_i32_1 = arith.constant 0 : i32
    return %c0_i32, %c0_i32_0 : i32, i32
  }
  func.func @transform_3(%arg0: i32) -> (i32, i32, i32) {
    %c0_i32 = arith.constant 0 : i32
    %c0_i32_0 = arith.constant 0 : i32
    %c0_i32_1 = arith.constant 0 : i32
    %c0_i32_2 = arith.constant 0 : i32
    return %c0_i32, %c0_i32_0, %c0_i32_1 : i32, i32, i32
  }
  func.func @transform_4(%arg0: i32) -> (i32, i32) {
    %c0_i32 = arith.constant 0 : i32
    %c0_i32_0 = arith.constant 0 : i32
    %c0_i32_1 = arith.constant 0 : i32
    return %c0_i32, %c0_i32_0 : i32, i32
  }
  func.func @transform_5(%arg0: i32) -> (i32, i32, i32) {
    %c0_i32 = arith.constant 0 : i32
    %c0_i32_0 = arith.constant 0 : i32
    %c0_i32_1 = arith.constant 0 : i32
    %c0_i32_2 = arith.constant 0 : i32
    return %c0_i32, %c0_i32_0, %c0_i32_1 : i32, i32, i32
  }
  func.func @transform_6(%arg0: i32) -> (i32, i32) {
    %c0_i32 = arith.constant 0 : i32
    %c0_i32_0 = arith.constant 0 : i32
    %c0_i32_1 = arith.constant 0 : i32
    return %c0_i32, %c0_i32_0 : i32, i32
  }
  func.func @transform_7(%arg0: i32) -> (i32, i32, i32) {
    %c0_i32 = arith.constant 0 : i32
    %c0_i32_0 = arith.constant 0 : i32
    %c0_i32_1 = arith.constant 0 : i32
    return %arg0, %c0_i32, %c0_i32_0 : i32, i32, i32
  }
}

</mosaic_0001>

<bundles_post_ra>
// kernel: tpu_custom_call.1
= control target key start
LH: loop header
LB: loop body
LE: loop exit
PB: predicated region body
PF: predicated region fallthrough
CT: control target
= control target key end

     0   :  { %12 = vsyncpa [#allocation5], 0  ;;  %s1222_s0 = inlined_call_operand.vmem [shape: f32[2,8,128], index: 0, kind: input, shape index: {}]   ;;  %s1223_s1 = inlined_call_operand.hbm [shape: f32[2,8,8], index: 1, kind: input, shape index: {}]   ;;  %s1224_s2 = inlined_call_operand.vmem [shape: f32[8,1], index: 2, kind: input, shape index: {}]   ;;  %s1225_s3 = inlined_call_operand.vmem [shape: f32[2,8,8], index: 3, kind: input, shape index: {}]   ;;  %s1226_s4 = inlined_call_operand.vmem [shape: f32[8,1], index: 4, kind: input, shape index: {}]   ;;  %s1227_s5 = inlined_call_operand.vmem [shape: f32[1,8,8], index: 5, kind: input, shape index: {}]   ;;  %s1228_s6 = inlined_call_operand.vmem [shape: f32[8,1], index: 6, kind: input, shape index: {}]   ;;  %s1229_s7 = inlined_call_operand.hbm [shape: f32[2,8,128], index: 7, kind: output, shape index: {}]  }
   0x1   :  { %13 = vsyncpa [#allocation6], 0 }
   0x2   :  { %15 = vsyncpa [#allocation6 + $0x1], 0  ;;  %s1053_s24 = smov 0   ;;  %s1055_s25 = smov 0  }
   0x3   :  { %s1057_s26 = smov 0   ;;  %s1059_s27 = smov 0  }
   0x4 LB: > { %s1074_s28 = sadd.s32 4294967295, %s1003_s27   ;;  %s798_s29 = sadd.s32 4294967294, %s1003_s27   ;;  %s1003_s27 = sphi %s1059_s27, %s1245_s27   ;;  %s999_s26 = sphi %s1057_s26, %s1244_s26   ;;  %s995_s25 = sphi %s1055_s25, %s1243_s25   ;;  %s991_s24 = sphi %s1053_s24, %s1242_s24  }
   0x5   : > { %s1078_s30 = sadd.s32 1, %s1003_s27   ;;  %s180_s8 = sadd.s32 1, %s999_s26 }
   0x6   : > { %s177_s9 = ssub.s32 %s1003_s27, %s1078_s30  ;;  %p190_p0 = scmp.ne.s32.totalorder %s999_s26, %s995_s25 }
   0x7   : > { %p178_p1 = scmp.eq.s32.totalorder %s177_s9, 0  ;;  %p191_p2 = scmp.eq.s32.totalorder %s1074_s28, 1 }
   0x8   : > { %p196_p3 = scmp.ne.s32.totalorder %s995_s25, %s991_s24  ;;  %p197_p4 = scmp.eq.s32.totalorder %s798_s29, 1 }
   0x9   : > { %s1089_s10 = scalar_select %p178_p1, %s999_s26, %s180_s8  }
   0xa   : > { %p1091_p5 = por %p191_p2, %p190_p0  ;;  %p1095_p6 = por %p197_p4, %p196_p3 }
   0xb   : > { %p799_p7 = scmp.ge.s32.totalorder %s1003_s27, 1  ;;  %p204_p8 = scmp.lt.s32.totalorder %s1003_s27, 3 }
   0xc   : > { %s1233_s11 = scalar_select %p1091_p5, 1, 0 }
   0xd   : > { %s1234_s12 = scalar_select %p1095_p6, 1, 0 }
   0xe   : > { %p1230_p9 = scmp.eq.s32.totalorder %s1074_s28, 0  ;;  %p1102_p10 = pnand %p799_p7, %p204_p8 }
   0xf   : > { %s1005_s14 = smov [#allocation4]   ;;  %s909_s19 = scalar_lea.hbm %s1223_s1, 256 }
  0x10   : > { %s1235_s13 = scalar_select %p1102_p10, 1, 0 }
  0x11   : > { %s216_s15 = sshll.u32 %s1005_s14, 4  ;;  %p857_p11 = pneg %p1102_p10  ;;  %s217_s15 = int_to_ptr.vmem [resolvable:$true] %s216_s15 }
  0x12   : > { %p910_p13 = scmp.ne.s32.totalorder %s1223_s1, %s909_s19  ;;  %p916_p3 = scmp.lt.u32.totalorder %s909_s19, %s1223_s1 }
  0x13   : > { %p1110_p12 = pnand %p1230_p9, %p857_p11 }
  0x15   : > { %p911_p0 = pneg %p1110_p12 }
  0x17   : > { %p912_p1 = pnand %p911_p0, %p910_p13 }
  0x19   : > { %p913_p2 = pneg %p912_p1 }
  0x1b   : > { %p918_p4 = pnand %p916_p3, %p913_p2 }
  0x1d   : > { %921 = shalt.err (!%p918_p4)
}
  0x1e   : > { %s922_s29 = scalar_lea.vmem %s217_s15, 256  ;;  %p930_p9 = scmp.lt.s32.totalorder %s217_s15, %s217_s15 }
  0x1f   : > { %p923_p7 = scmp.ne.s32.totalorder %s217_s15, %s922_s29  ;;  %p931_p6 = scmp.lt.s32.totalorder %s922_s29, %s922_s29 }
  0x21   : > { %p925_p8 = pnand %p923_p7, %p911_p0  ;;  %p932_p5 = por %p931_p6, %p930_p9 }
  0x23   : > { %p926_p11 = pneg %p925_p8 }
  0x25   : > { %p933_p10 = pnand %p932_p5, %p926_p11 }
  0x27   : > { %936 = shalt.err (!%p933_p10)
}
  0x28   : > { %s1006_s8 = smov 128   ;;  %s1007_s9 = smov 8  }
  0x29   : > { %860 = dma.hbm_to_vmem [thread:$0]  (!%p1110_p12), %s1223_s1, 256, %s217_s15, [#allocation5], %s1006_s8, %s1006_s8, %s1007_s9  }
  0x2a   : > { %p1237_p13 = scmp.ne.s32.totalorder %s1235_s13, 0 }
  0x2b   : > { %p1238_p1 = scmp.eq.s32.totalorder (!%p1237_p13), %s1074_s28, 0 }
  0x2c   : > { %254 = sbr.rel (%p1237_p13) target bundleno = 747 (0x2eb), region = 48 }
  0x33   : > { %982 = dma.done.wait (%p1238_p1), [#allocation5], 256   ;;  %p1239_p0 = pmov %p1238_p1 }
  0x34   : > { %p285_p5 = scmp.lt.s32.totalorder %s1074_s28, 1  ;;  %v1008_v0 = vmov 0.0   ;;  %s1009_s18 = smov 1   ;;  %vm1010_vm0 = vmmov 0   ;;  %v1011_v1 = vmov 0   ;;  %vm297_vm1 = vcmask 64512  }
  0x35   : > { %984 = vsyncadd (%p1239_p0), [#allocation5], 4294967040  ;;  %373 = vrot.lane.b32.xlu0 %v1008_v0, %s1009_s18  ;;  %826 = vmatprep.subr.mxu0 %v1008_v0  ;;  %v296_v3 = vld [vmem:[#allocation4 + $0x8] sm:$0xff]  ;;  %v453_v4 = vld [vmem:[%s1224_s2] sm:$0xff]  ;;  %vm377_vm2 = vcmask 7168   ;;  %s282_s19 = sand.u32 1, %s995_s25  }
  0x36   : > { %s286_s16 = scalar_select %p285_p5, %s1074_s28, 1  ;;  %828 = vmatprep.mubr.msk.f32.mxu0 %vm1010_vm0, %v1008_v0  ;;  %831 = vmatprep.subr.mxu1 %v1008_v0  ;;  %v622_v5 = vld [vmem:[%s1226_s4] sm:$0xff]  ;;  %v808_v18 = vld [vmem:[%s1225_s3 + $0x8] sm:$0xff] }
  0x37   : > { %833 = vmatprep.mubr.msk.f32.mxu1 %vm1010_vm0, %v1008_v0  ;;  %907 = vset.pattern.permute.xlu1 %v1011_v1  ;;  %v292_v8 = vld [vmem:[#allocation4] sm:$0xff]  ;;  %s813_s21 = sshll.u32 %s1074_s28, 7  ;;  %s714_s14 = scalar_lea.sflag [#allocation6], %s282_s19 }
  0x38   : > { %s805_s13 = sshll.u32 %s286_s16, 3  ;;  %908 = vset.pattern.permute.xlu0 %v1011_v1  ;;  %456 = vperm.xlu1 %907, %v453_v4   ;;  %v631_v19 = vld [vmem:[%s1228_s6] sm:$0xff]  ;;  %s1180_s9 = scalar_lea.hbm %s1229_s7, %s813_s21 }
  0x39   : > { %s288_s20 = scalar_lea.vmem %s1222_s0, %s805_s13  ;;  %v630_v20 = vld [vmem:[%s1227_s5] sm:$0xff]  ;;  %p1240_p9 = scmp.ne.s32.totalorder %s1233_s11, 0 }
  0x3a   : > { %v289_v2 = vld [vmem:[%s288_s20] sm:$0xff]  ;;  %s804_s20 = sshll.u32 %s282_s19, 3  ;;  %s1012_s28 = smov [#allocation7]  }
  0x3b   : > { %375 = vrot.lane.b32.xlu0 %v289_v2, %s1009_s18  ;;  %827 = vmatpush3.msra.mxu0 %v289_v2  ;;  %v463_v23 = vld [vmem:[%s1225_s3] sm:$0xff]  ;;  %s284_s22 = scalar_lea.vmem [#allocation7], %s804_s20  ;;  %s941_s16 = sshll.u32 %s1012_s28, 4  ;;  %s942_s16 = int_to_ptr.vmem [resolvable:$false] %s941_s16 }
  0x3c   : > { %829 = vmatmul.mubr.msk.f32.vlgmr.msra.gmra.mrb[0].mxu0 %vm297_vm1, %v296_v3  ;;  %836 = vmatprep.subr.mxu0 %v1008_v0  ;;  %s727_s23 = sshll.u32 %s284_s22, 4  ;;  %s943_s13 = scalar_lea.vmem %s942_s16, 256  ;;  %s1182_s23 = int_to_ptr.vmem [resolvable:$true] %s727_s23 }
  0x3d   : > { %838 = vmatprep.mubr.msk.f32.mxu0 %vm1010_vm0, %v1008_v0  ;;  %543 = vrot.lane.b32.xlu1 %v1008_v0, %s1009_s18  ;;  %s937_s17 = scalar_lea.vmem %s1182_s23, 128  ;;  %p944_p2 = scmp.lt.s32.totalorder %s1182_s23, %s942_s16 }
  0x3e   : > { %p938_p6 = scmp.ne.s32.totalorder %s1182_s23, %s937_s17  ;;  %p945_p3 = scmp.lt.s32.totalorder %s943_s13, %s937_s17 }
  0x40   : > { %p939_p10 = pnand %p938_p6, %p1240_p9  ;;  %p946_p4 = por %p945_p3, %p944_p2 }
  0x41   : > { %625 = vperm.xlu1 %907, %v622_v5  }
  0x42   : > { %p940_p12 = pneg %p939_p10 }
  0x44   : > { %p947_p7 = pnand %p946_p4, %p940_p12 }
  0xa7   : > { %v374_v6 = vpop.permute.xlu0 %373 }
  0xad   : > { %v376_v7 = vpop.permute.xlu0 %375 }
  0xae   : > { %v378_v9 = vsel %vm377_vm2, %v374_v6, %v376_v7 }
  0xaf   : > { %832 = vmatpush3.msra.mxu1 %v378_v9 }
  0xb0   : > { %834 = vmatmul.mubr.msk.f32.vlgmr.msra.gmra.mrb[0].mxu1 %vm297_vm1, %v292_v8  ;;  %841 = vmatprep.subr.mxu1 %v1008_v0 }
  0xb1   : > { %843 = vmatprep.mubr.msk.f32.mxu1 %vm1010_vm0, %v1008_v0 }
  0xb7   : > { %v457_v15 = vpop.permute.xlu1 %456 }
  0xbb   : > { %v544_v21 = vpop.permute.xlu1 %543 }
  0xc0   : > { %v626_v33 = vpop.permute.xlu1 %625 }
 0x10f   : > { %v367_v10 = vpop.f32.mrb[0].mxu0 }
 0x110   : > { %v830_v11 = vpop.f32.mrb[1].mxu0 }
 0x183   : > { %v449_v12 = vpop.f32.mrb[0].mxu1 }
 0x184   : > { %v450_v13 = vadd.f32 %v449_v12, %v367_v10  ;;  %v835_v14 = vpop.f32.mrb[1].mxu1 }
 0x186   : > { %v459_v16 = vadd.f32 %v457_v15, %v450_v13 }
 0x188   : > { %v460_v17 = vmax.f32 %v459_v16, 0.0 }
 0x18a   : > { %545 = vrot.lane.b32.xlu0 %v460_v17, %s1009_s18  ;;  %837 = vmatpush3.msra.mxu0 %v460_v17 }
 0x18b   : > { %839 = vmatmul.mubr.msk.f32.vlgmr.msra.gmra.mrb[2].mxu0 %vm297_vm1, %v808_v18  ;;  %846 = vmatprep.subr.mxu0 %v1008_v0 }
 0x18c   : > { %847 = vmatpush3.msra.mxu0 %v289_v2  ;;  %848 = vmatprep.mubr.msk.f32.mxu0 %vm1010_vm0, %v1008_v0 }
 0x18e   : > { %634 = vperm.xlu0 %908, %v631_v19  }
 0x18f   : > { %849 = vmatmul.mubr.msk.f32.vlgmr.msra.gmra.mrb[4].mxu0 %vm297_vm1, %v630_v20 }
 0x1fc   : > { %v546_v22 = vpop.permute.xlu0 %545 }
 0x1fd   : > { %v547_v24 = vsel %vm377_vm2, %v544_v21, %v546_v22 }
 0x1fe   : > { %842 = vmatpush3.msra.mxu1 %v547_v24 }
 0x1ff   : > { %844 = vmatmul.mubr.msk.f32.vlgmr.msra.gmra.mrb[2].mxu1 %vm297_vm1, %v463_v23 }
 0x20d   : > { %v635_v30 = vpop.permute.xlu0 %634 }
 0x25e   : > { %v537_v25 = vpop.f32.mrb[2].mxu0 }
 0x25f   : > { %v840_v26 = vpop.f32.mrb[3].mxu0 }
 0x262   : > { %v706_v27 = vpop.f32.mrb[4].mxu0 }
 0x263   : > { %v850_v28 = vpop.f32.mrb[5].mxu0  ;;  %v707_v35 = vadd.f32 %v706_v27, %v635_v30 }
 0x2d2   : > { %v618_v29 = vpop.f32.mrb[2].mxu1 }
 0x2d3   : > { %v619_v31 = vadd.f32 %v618_v29, %v537_v25  ;;  %v845_v32 = vpop.f32.mrb[3].mxu1 }
 0x2d5   : > { %v628_v34 = vadd.f32 %v626_v33, %v619_v31 }
 0x2d7   : > { %v629_v36 = vmax.f32 %v628_v34, 0.0 }
 0x2d9   : > { %v710_v37 = vadd.f32 %v707_v35, %v629_v36 }
 0x2db   : > { %v711_v38 = vmax.f32 %v710_v37, 0.0 }
 0x2dd   : > { %712 = vst [vmem:[%s284_s22] sm:$0xff] %v711_v38 }
 0x2de   : > { %950 = shalt.err (!%p947_p7)
}
 0x2df   : > { %s951_s18 = scalar_lea.hbm %s1180_s9, 128  ;;  %s955_s20 = scalar_lea.hbm %s1229_s7, 256 }
 0x2e0   : > { %p952_p8 = scmp.ne.s32.totalorder %s1180_s9, %s951_s18  ;;  %p956_p1 = scmp.lt.u32.totalorder %s1180_s9, %s1229_s7 }
 0x2e1   : > { %p957_p0 = scmp.lt.u32.totalorder %s955_s20, %s951_s18  ;;  %p959_p6 = scmp.lt.u32.totalorder %s951_s18, %s1180_s9 }
 0x2e2   : > { %p953_p11 = pnand %p952_p8, %p1240_p9 }
 0x2e3   : > { %p958_p5 = por %p957_p0, %p956_p1 }
 0x2e4   : > { %p954_p13 = pneg %p953_p11 }
 0x2e5   : > { %p960_p10 = por %p959_p6, %p958_p5 }
 0x2e7   : > { %p961_p12 = pnand %p960_p10, %p954_p13 }
 0x2e9   : > { %964 = shalt.err (!%p961_p12)
}
 0x2ea   : > { %855 = dma.vmem_to_hbm [thread:$0]  (%p1240_p9), %s1182_s23, 128, %s1180_s9, %s714_s14  }
 0x2eb PF: > { %p867_p2 = scmp.ge.s32.totalorder %s1003_s27, 2  ;;  %s739_s29 = sand.u32 1, %s991_s24  }
 0x2ec   : > { %p1241_p3 = scmp.ne.s32.totalorder %s1234_s12, 0  ;;  %s740_s8 = scalar_lea.sflag [#allocation6], %s739_s29 }
 0x2ee   : > { %p862_p4 = pnand %p867_p2, %p1241_p3 }
 0x2f0   : > { %986 = dma.done.wait (!%p862_p4), %s740_s8, 128  }
 0x2f1   : > { %988 = vsyncadd (!%p862_p4), %s740_s8, 4294967168  ;;  %p18_p7 = scmp.ge.s32.totalorder %s1078_s30, 4   ;;  %s1242_s24 = smov %s995_s25 }
 0x2f2   : > { %s1243_s25 = smov %s999_s26  ;;  %s1244_s26 = smov %s1089_s10 }
 0x2f3   : > { %s1245_s27 = smov %s1078_s30  ;;  %20 = sbr.rel (!%p18_p7) target bundleno = 4 (0x4), region = 90 }
 0x2fa   :  { %745 = vsyncpa [#allocation5], 1 }
 0x2fb   :  { %747 = vsyncpa [#allocation5 + $0x1], 1 }
 0x2fc   :  { %748 = vsyncpa [#allocation6], 1 }
 0x2fd   :  { %750 = vsyncpa [#allocation6 + $0x1], 1 }

</bundles_post_ra>
